<compile_context>
chip_gen: v6e
topology: v6e:2x2x1
jax: 0.10.0
libtpu: 0.0.40
codegen_flags: <defaults>
</compile_context>

<pallas_src>
import math
import functools

import jax
import jax.numpy as jnp
from jax.experimental import pallas as pl
from jax.experimental.pallas import tpu as pltpu


def _round_up(x, m):
    return (x + m - 1) // m * m


def _pick_tile(target, total, granularity=128):
    """Largest multiple of `granularity` <= target that divides `total`.

    `total` must itself be a multiple of `granularity`, so the loop always
    terminates (granularity divides total).
    """
    t = max(granularity, min(target, total))
    t = (t // granularity) * granularity
    while total % t:
        t -= granularity
    return t


# ---------------------------------------------------------------------------
# Pass 1: support = x @ weight   ([N_pad, F_in] @ [F_in, F_pad])
# (Tiny GEMM; kept as a Pallas kernel so the whole forward is Pallas.)
# ---------------------------------------------------------------------------
def _support_kernel(x_ref, w_ref, o_ref):
    o_ref[...] = jnp.dot(
        x_ref[...], w_ref[...], preferred_element_type=jnp.float32
    ).astype(o_ref.dtype)


# ---------------------------------------------------------------------------
# Pass 2: out = adj @ support + bias
#   K-tiled matmul; accumulate directly into the resident f32 output tile.
# ---------------------------------------------------------------------------
def _aggregate_kernel(adj_ref, s_ref, b_ref, o_ref, *, tk, support_resident,
                      compute_dtype):
    k = pl.program_id(1)

    @pl.when(k == 0)
    def _():
        o_ref[...] = jnp.zeros_like(o_ref)

    # In-kernel cast of the adj tile (f32 -> bf16); VPU work that hides under
    # the adj DMA.  Avoids a standalone XLA cast = full extra HBM pass.
    adj_tile = adj_ref[...].astype(compute_dtype)

    if support_resident:
        # Whole support matrix is VMEM-resident (constant-index block);
        # slice the K-slab in-kernel.
        start = pl.multiple_of(k * tk, 128)
        s_tile = s_ref[pl.ds(start, tk), :]
    else:
        s_tile = s_ref[...]

    o_ref[...] += jnp.dot(adj_tile, s_tile, preferred_element_type=jnp.float32)

    @pl.when(k == pl.num_programs(1) - 1)
    def _():
        o_ref[...] += b_ref[...]


def graph_convolution(x, adj, weight, bias=None, *, tm=1024, tk=2048,
                      compute_dtype=jnp.bfloat16):
    """Pallas GCN layer: adj @ (x @ weight) + bias (dense adjacency).

    Note: bf16 compute (f32 accumulation) loses ~3 significant digits on the
    row-normalized adjacency entries; pass compute_dtype=jnp.float32 if exact
    f32 aggregation is required.
    """
    N, f_in = x.shape
    f_out = weight.shape[1]
    assert adj.shape == (N, N)

    # Lane-dense output: pad F_out to a multiple of 128.  Do NOT widen further
    # (kernel is HBM-bound; wider f_pad only multiplies traffic).
    f_pad = _round_up(f_out, 128)

    # Pad N so the tiles divide it exactly.  Zero rows/cols of adj and zero
    # rows of x contribute nothing to the contraction; padded output rows are
    # sliced off at the end.
    N_pad = _round_up(N, 128)

    # --- tile selection ----------------------------------------------------
    tm = _pick_tile(tm, N_pad)
    tk = _pick_tile(tk, N_pad)
    # v7x megacore: keep >= 2 row tiles so the "parallel" axis actually splits
    # across both TensorCores, and prefer an even tile count.
    if N_pad // tm < 2 and N_pad >= 256:
        tm = _pick_tile(N_pad // 2, N_pad)
    n_row_tiles = N_pad // tm
    if n_row_tiles > 1 and n_row_tiles % 2 == 1 and tm > 128:
        cand = _pick_tile(tm // 2, N_pad)
        if (N_pad // cand) % 2 == 0:
            tm = cand

    sup_bpe = jnp.dtype(compute_dtype).itemsize
    adj_bpe = jnp.dtype(adj.dtype).itemsize

    # Keep the whole support matrix VMEM-resident (DMA'd once, no per-row-tile
    # re-reads) when it is small; otherwise stream (tk, f_pad) K-slabs.
    # Threshold is conservative for v7x's 64 MiB/TC VMEM (counts 2x buffering).
    support_resident = (2 * N_pad * f_pad * sup_bpe) <= (8 << 20)

    # --- cheap operands: pad + cast on the wrapper side ---------------------
    x_p = jnp.zeros((N_pad, f_in), compute_dtype).at[:N].set(
        x.astype(compute_dtype))
    w_pad = jnp.zeros((f_in, f_pad), compute_dtype).at[:, :f_out].set(
        weight.astype(compute_dtype))
    if bias is None:
        b_pad = jnp.zeros((1, f_pad), jnp.float32)
    else:
        b_pad = jnp.zeros((1, f_pad), jnp.float32).at[0, :f_out].set(
            bias.astype(jnp.float32))

    # adj: no dtype cast in the wrapper (would be an extra full HBM pass on the
    # dominant operand).  Only a geometry pad when N is not tile-aligned; for
    # production, callers should supply an already padded (and cached) adj.
    if N_pad != N:
        adj_p = jnp.zeros((N_pad, N_pad), adj.dtype).at[:N, :N].set(adj)
    else:
        adj_p = adj

    # -------- pass 1: support = x @ W (computed exactly once) ---------------
    support = pl.pallas_call(
        _support_kernel,
        out_shape=jax.ShapeDtypeStruct((N_pad, f_pad), compute_dtype),
        grid=(N_pad // tm,),
        in_specs=[
            pl.BlockSpec((tm, f_in), lambda i: (i, 0)),       # x row tile
            pl.BlockSpec((f_in, f_pad), lambda i: (0, 0)),    # full weight
        ],
        out_specs=pl.BlockSpec((tm, f_pad), lambda i: (i, 0)),
        compiler_params=pltpu.CompilerParams(
            dimension_semantics=("parallel",),
        ),
    )(x_p, w_pad)

    # -------- pass 2: out = adj @ support + bias (K-tiled, f32 out/acc) -----
    if support_resident:
        s_spec = pl.BlockSpec((N_pad, f_pad), lambda i, k: (0, 0))
        sup_vmem = 2 * N_pad * f_pad * sup_bpe
    else:
        s_spec = pl.BlockSpec((tk, f_pad), lambda i, k: (k, 0))
        sup_vmem = 2 * tk * f_pad * sup_bpe

    vmem_bytes = (
        2 * tm * tk * adj_bpe          # adj tiles (native dtype), 2x buffered
        + sup_vmem                     # support (resident or K-slab), 2x
        + 2 * tm * f_pad * 4           # f32 output tile (resident across k)
        + 2 * f_pad * 4                # bias
        + (4 << 20)                    # headroom for internal scratch
    )
    vmem_bytes = int(max(vmem_bytes, 32 << 20))   # never below v7x default cap

    kernel = functools.partial(
        _aggregate_kernel, tk=tk, support_resident=support_resident,
        compute_dtype=compute_dtype)

    # TODO(synk): torch.spmm uses a sparse adjacency; here it is densified.
    # A scalar-prefetched list of nonzero (i, k) adj tiles (PrefetchScalarGridSpec
    # + data-dependent index_map) would skip all-zero tiles -- the biggest win
    # on real sparse graphs -- but needs block-nonzero metadata from the caller.
    out_pad = pl.pallas_call(
        kernel,
        out_shape=jax.ShapeDtypeStruct((N_pad, f_pad), jnp.float32),
        grid=(N_pad // tm, N_pad // tk),
        in_specs=[
            pl.BlockSpec((tm, tk), lambda i, k: (i, k)),      # adj tile (f32)
            s_spec,                                           # support
            pl.BlockSpec((1, f_pad), lambda i, k: (0, 0)),    # bias
        ],
        out_specs=pl.BlockSpec((tm, f_pad), lambda i, k: (i, 0)),
        compiler_params=pltpu.CompilerParams(
            # Rows shard across TensorCores; K is the sequential reduction.
            dimension_semantics=("parallel", "arbitrary"),
            vmem_limit_bytes=vmem_bytes,
        ),
    )(adj_p, support, b_pad)

    return out_pad[:N, :f_out]


if __name__ == "__main__":
    # Small, deterministic synthetic setup consistent with the module.
    N = 128          # number of graph nodes
    in_features = 64
    out_features = 32

    key = jax.random.PRNGKey(0)
    kx, ka, kw, kb = jax.random.split(key, 4)

    # Node features.
    x = jax.random.normal(kx, (N, in_features), dtype=jnp.float32)

    # Symmetric row-normalized adjacency (dense stand-in for torch.spmm's sparse adj).
    a = (jax.random.uniform(ka, (N, N)) > 0.9).astype(jnp.float32)
    a = a + a.T + jnp.eye(N, dtype=jnp.float32)
    a = jnp.minimum(a, 1.0)
    deg = jnp.sum(a, axis=1, keepdims=True)
    adj = a / deg

    # Parameter init mirrors reset_parameters(): uniform(-stdv, stdv), stdv = 1/sqrt(out_features).
    stdv = 1.0 / math.sqrt(out_features)
    weight = jax.random.uniform(kw, (in_features, out_features),
                                minval=-stdv, maxval=stdv, dtype=jnp.float32)
    bias = jax.random.uniform(kb, (out_features,),
                              minval=-stdv, maxval=stdv, dtype=jnp.float32)

    out = jax.block_until_ready(
        jax.jit(graph_convolution)(x, adj, weight, bias)
    )

    # Pure-JAX f32 reference; tolerance loosened for bf16 compute (f32 accum).
    ref = adj @ (x @ weight) + bias[None, :]
    assert out.shape == (N, out_features)
    assert jnp.allclose(out, ref, atol=2e-2, rtol=2e-2), "mismatch vs reference"

    print("KERNEL_OK")
</pallas_src>

<mosaic_0001>
module attributes {stable_mosaic.version = 11 : i64} {
  func.func @_support_kernel(%arg0: i32, %arg1: memref<128x64xbf16, #tpu.memory_space<vmem>>, %arg2: memref<64x128xbf16, #tpu.memory_space<vmem>>, %arg3: memref<128x128xbf16, #tpu.memory_space<vmem>>) attributes {dimension_semantics = [#tpu.dimension_semantics<parallel>], iteration_bounds = array<i64: 1>, scalar_prefetch = 0 : i64, scratch_operands = 0 : i64, tpu.core_type = #tpu.core_type<tc>, window_params = [{transform_indices = @transform_0, window_bounds = array<i64: 128, 64>}, {pipeline_mode = #tpu.pipeline_mode<synchronous>, transform_indices = @transform_1, window_bounds = array<i64: 64, 128>}, {transform_indices = @transform_2, window_bounds = array<i64: 128, 128>}]} {
    %c0 = arith.constant 0 : index
    %c0_0 = arith.constant 0 : index
    %0 = vector.load %arg1[%c0, %c0_0] : memref<128x64xbf16, #tpu.memory_space<vmem>>, vector<128x64xbf16>
    %c0_1 = arith.constant 0 : index
    %c0_2 = arith.constant 0 : index
    %1 = vector.load %arg2[%c0_1, %c0_2] : memref<64x128xbf16, #tpu.memory_space<vmem>>, vector<64x128xbf16>
    %cst = arith.constant dense<0.000000e+00> : vector<128x128xf32>
    %2 = tpu.matmul %0, %1, %cst {dimension_numbers = #tpu.dot_dimension_numbers<[1], [0], [0], [1], [0, 0, 1, 1], [], []>} : vector<128x64xbf16>, vector<64x128xbf16>, vector<128x128xf32> -> vector<128x128xf32>
    %3 = arith.truncf %2 : vector<128x128xf32> to vector<128x128xbf16>
    %c0_3 = arith.constant 0 : index
    %c0_4 = arith.constant 0 : index
    %4 = vector.load %arg3[%c0_3, %c0_4] : memref<128x128xbf16, #tpu.memory_space<vmem>>, vector<128x128xbf16>
    tpu.vector_store %arg3[%c0_3, %c0_4], %3 {strides = array<i32>} : memref<128x128xbf16, #tpu.memory_space<vmem>>, vector<128x128xbf16>,
    return
  }
  func.func @transform_0(%arg0: i32) -> (i32, i32) {
    %c0_i32 = arith.constant 0 : i32
    %c0_i32_0 = arith.constant 0 : i32
    return %arg0, %c0_i32 : i32, i32
  }
  func.func @transform_1(%arg0: i32) -> (i32, i32) {
    %c0_i32 = arith.constant 0 : i32
    %c0_i32_0 = arith.constant 0 : i32
    %c0_i32_1 = arith.constant 0 : i32
    return %c0_i32, %c0_i32_0 : i32, i32
  }
  func.func @transform_2(%arg0: i32) -> (i32, i32) {
    %c0_i32 = arith.constant 0 : i32
    %c0_i32_0 = arith.constant 0 : i32
    return %arg0, %c0_i32 : i32, i32
  }
}

module attributes {stable_mosaic.version = 11 : i64} {
  func.func @_aggregate_kernel(%arg0: i32, %arg1: i32, %arg2: memref<128x128xf32, #tpu.memory_space<vmem>>, %arg3: memref<128x128xbf16, #tpu.memory_space<vmem>>, %arg4: memref<1x128xf32, #tpu.memory_space<vmem>>, %arg5: memref<128x128xf32, #tpu.memory_space<vmem>>) attributes {dimension_semantics = [#tpu.dimension_semantics<parallel>, #tpu.dimension_semantics<arbitrary>], iteration_bounds = array<i64: 1, 1>, scalar_prefetch = 0 : i64, scratch_operands = 0 : i64, tpu.core_type = #tpu.core_type<tc>, window_params = [{transform_indices = @transform_0, window_bounds = array<i64: 128, 128>}, {pipeline_mode = #tpu.pipeline_mode<synchronous>, transform_indices = @transform_1, window_bounds = array<i64: 128, 128>}, {pipeline_mode = #tpu.pipeline_mode<synchronous>, transform_indices = @transform_2, window_bounds = array<i64: 1, 128>}, {transform_indices = @transform_3, window_bounds = array<i64: 128, 128>}]} {
    %c0_i32 = arith.constant 0 : i32
    %0 = arith.cmpi eq, %arg1, %c0_i32 : i32
    %1 = arith.extui %0 : i1 to i32
    %c0_i32_0 = arith.constant 0 : i32
    %2 = arith.cmpi ne, %1, %c0_i32_0 : i32
    scf.if %2 {
      %cst_9 = arith.constant 0.000000e+00 : f32
      %16 = vector.broadcast %cst_9 : f32 to vector<128x128xf32>
      %c0_10 = arith.constant 0 : index
      %c0_11 = arith.constant 0 : index
      %17 = vector.load %arg5[%c0_10, %c0_11] : memref<128x128xf32, #tpu.memory_space<vmem>>, vector<128x128xf32>
      tpu.vector_store %arg5[%c0_10, %c0_11], %16 {strides = array<i32>} : memref<128x128xf32, #tpu.memory_space<vmem>>, vector<128x128xf32>,
    } else {
    }
    %c0 = arith.constant 0 : index
    %c0_1 = arith.constant 0 : index
    %3 = vector.load %arg2[%c0, %c0_1] : memref<128x128xf32, #tpu.memory_space<vmem>>, vector<128x128xf32>
    %4 = arith.truncf %3 : vector<128x128xf32> to vector<128x128xbf16>
    %c128_i32 = arith.constant 128 : i32
    %5 = arith.muli %arg1, %c128_i32 : i32
    %6 = tpu.assume_multiple %5, 128 : i32
    %7 = arith.index_cast %6 : i32 to index
    %c0_2 = arith.constant 0 : index
    %8 = vector.load %arg3[%7, %c0_2] : memref<128x128xbf16, #tpu.memory_space<vmem>>, vector<128x128xbf16>
    %c0_3 = arith.constant 0 : index
    %c0_4 = arith.constant 0 : index
    %9 = vector.load %arg5[%c0_3, %c0_4] : memref<128x128xf32, #tpu.memory_space<vmem>>, vector<128x128xf32>
    %cst = arith.constant dense<0.000000e+00> : vector<128x128xf32>
    %10 = tpu.matmul %4, %8, %cst {dimension_numbers = #tpu.dot_dimension_numbers<[1], [0], [0], [1], [0, 0, 1, 1], [], []>} : vector<128x128xbf16>, vector<128x128xbf16>, vector<128x128xf32> -> vector<128x128xf32>
    %11 = arith.addf %9, %10 : vector<128x128xf32>
    %c0_5 = arith.constant 0 : index
    %c0_6 = arith.constant 0 : index
    %12 = vector.load %arg5[%c0_5, %c0_6] : memref<128x128xf32, #tpu.memory_space<vmem>>, vector<128x128xf32>
    tpu.vector_store %arg5[%c0_5, %c0_6], %11 {strides = array<i32>} : memref<128x128xf32, #tpu.memory_space<vmem>>, vector<128x128xf32>,
    %c0_i32_7 = arith.constant 0 : i32
    %13 = arith.cmpi eq, %arg1, %c0_i32_7 : i32
    %14 = arith.extui %13 : i1 to i32
    %c0_i32_8 = arith.constant 0 : i32
    %15 = arith.cmpi ne, %14, %c0_i32_8 : i32
    scf.if %15 {
      %c0_9 = arith.constant 0 : index
      %c0_10 = arith.constant 0 : index
      %16 = vector.load %arg5[%c0_9, %c0_10] : memref<128x128xf32, #tpu.memory_space<vmem>>, vector<128x128xf32>
      %c0_11 = arith.constant 0 : index
      %c0_12 = arith.constant 0 : index
      %17 = vector.load %arg4[%c0_11, %c0_12] : memref<1x128xf32, #tpu.memory_space<vmem>>, vector<1x128xf32>
      %18 = vector.broadcast %17 : vector<1x128xf32> to vector<128x128xf32>
      %19 = arith.addf %16, %18 : vector<128x128xf32>
      %c0_13 = arith.constant 0 : index
      %c0_14 = arith.constant 0 : index
      %20 = vector.load %arg5[%c0_13, %c0_14] : memref<128x128xf32, #tpu.memory_space<vmem>>, vector<128x128xf32>
      tpu.vector_store %arg5[%c0_13, %c0_14], %19 {strides = array<i32>} : memref<128x128xf32, #tpu.memory_space<vmem>>, vector<128x128xf32>,
    } else {
    }
    return
  }
  func.func @transform_0(%arg0: i32, %arg1: i32) -> (i32, i32) {
    %c0_i32 = arith.constant 0 : i32
    return %arg0, %arg1 : i32, i32
  }
  func.func @transform_1(%arg0: i32, %arg1: i32) -> (i32, i32) {
    %c0_i32 = arith.constant 0 : i32
    %c0_i32_0 = arith.constant 0 : i32
    %c0_i32_1 = arith.constant 0 : i32
    return %c0_i32, %c0_i32_0 : i32, i32
  }
  func.func @transform_2(%arg0: i32, %arg1: i32) -> (i32, i32) {
    %c0_i32 = arith.constant 0 : i32
    %c0_i32_0 = arith.constant 0 : i32
    %c0_i32_1 = arith.constant 0 : i32
    return %c0_i32, %c0_i32_0 : i32, i32
  }
  func.func @transform_3(%arg0: i32, %arg1: i32) -> (i32, i32) {
    %c0_i32 = arith.constant 0 : i32
    %c0_i32_0 = arith.constant 0 : i32
    return %arg0, %c0_i32 : i32, i32
  }
}

</mosaic_0001>

<bundles_post_ra>
// kernel: graph_convolution.2
= control target key start
LH: loop header
LB: loop body
LE: loop exit
PB: predicated region body
PF: predicated region fallthrough
CT: control target
= control target key end

     0   :  { %vm100_vm0 = vcmask 523264   ;;  %s544_s1 = inlined_call_operand.vmem [shape: bf16[64,128], index: 1, kind: input, shape index: {}]   ;;  %s545_s0 = inlined_call_operand.vmem [shape: bf16[128,64], index: 0, kind: input, shape index: {}]   ;;  %s546_s2 = inlined_call_operand.vmem [shape: bf16[128,128], index: 2, kind: output, shape index: {}]  }
   0x1   :  { %v449_v0 = vld [vmem:[%s544_s1 + $0x18] sm:$0xff]   ;;  %v450_v1 = vld [vmem:[%s544_s1 + $0x10] sm:$0xff]   ;;  %v451_v2 = vld [vmem:[%s544_s1 + $0x8] sm:$0xff]  }
   0x2   :  { %417 = vmatprep.subr.bf16.mxu0 %v449_v0  ;;  %441 = vmatprep.subr.bf16.mxu1 %v449_v0  ;;  %v453_v3 = vld [vmem:[%s545_s0] sm:$0xff]   ;;  %v455_v6 = vld [vmem:[%s545_s0 + $0x8] sm:$0xff]   ;;  %v457_v8 = vld [vmem:[%s545_s0 + $0x10] sm:$0xff]  }
   0x3   :  { %418 = vmatpush3.bf16.msra.mxu0 %v449_v0  ;;  %445 = vmatpush3.bf16.msra.mxu1 %v449_v0  ;;  %v454_v4 = vld [vmem:[%s545_s0 + $0x20] sm:$0xff]   ;;  %v456_v7 = vld [vmem:[%s545_s0 + $0x28] sm:$0xff]   ;;  %v458_v9 = vld [vmem:[%s545_s0 + $0x30] sm:$0xff]  }
   0x4   :  { %419 = vmatprep.subr.bf16.mxu0 %v450_v1  ;;  %442 = vmatprep.subr.bf16.mxu1 %v450_v1  ;;  %v452_v5 = vld [vmem:[%s544_s1] sm:$0xff]   ;;  %v459_v10 = vld [vmem:[%s545_s0 + $0x18] sm:$0xff]  }
   0x5   :  { %425 = vmatprep.mubr.msk.bf16.mxu0 %vm100_vm0, %v453_v3  ;;  %433 = vmatprep.mubr.msk.bf16.mxu1 %vm100_vm0, %v454_v4  ;;  %v460_v11 = vld [vmem:[%s545_s0 + $0x38] sm:$0xff]  }
   0x7   :  { %420 = vmatpush3.bf16.msra.mxu0 %v450_v1  ;;  %446 = vmatpush3.bf16.msra.mxu1 %v450_v1 }
   0x8   :  { %421 = vmatprep.subr.bf16.mxu0 %v451_v2  ;;  %443 = vmatprep.subr.bf16.mxu1 %v451_v2 }
   0xb   :  { %422 = vmatpush3.bf16.msra.mxu0 %v451_v2  ;;  %447 = vmatpush3.bf16.msra.mxu1 %v451_v2 }
   0xc   :  { %423 = vmatprep.subr.bf16.mxu0 %v452_v5  ;;  %444 = vmatprep.subr.bf16.mxu1 %v452_v5 }
   0xf   :  { %424 = vmatpush3.bf16.msra.mxu0 %v452_v5  ;;  %448 = vmatpush3.bf16.msra.mxu1 %v452_v5 }
  0x12   :  { %426 = vmatmul.mubr.msk.bf16.vlgmr.msra.gmra.mxu0 %vm100_vm0, %v455_v6  ;;  %434 = vmatmul.mubr.msk.bf16.vlgmr.msra.gmra.mxu1 %vm100_vm0, %v456_v7 }
  0x13   :  { %429 = vmatprep.mubr.msk.bf16.mxu0 %vm100_vm0, %v457_v8  ;;  %437 = vmatprep.mubr.msk.bf16.mxu1 %vm100_vm0, %v458_v9 }
  0x1a   :  { %430 = vmatmul.mubr.msk.bf16.gmra.mxu0 %vm100_vm0, %v459_v10  ;;  %438 = vmatmul.mubr.msk.bf16.gmra.mxu1 %vm100_vm0, %v460_v11 }
  0xd2   :  { %v427_v12 = vpop.f32.mrf.mxu0  ;;  %v435_v13 = vpop.f32.mrf.mxu1 }
  0xd4   :  { %v159_v14 = vpop.f32.mrf.mxu0  ;;  %v191_v15 = vpop.f32.mrf.mxu1 }
  0xd6   :  { %v428_v16 = vpop.f32.mrf.mxu0  ;;  %v436_v17 = vpop.f32.mrf.mxu1 }
  0xd7   :  { %v366_v18 = vpack.c.bf16 %v428_v16, %v427_v12  ;;  %v386_v19 = vpack.c.bf16 %v436_v17, %v435_v13 }
  0xd8   :  { %v162_v20 = vpop.f32.mrf.mxu0  ;;  %v194_v21 = vpop.f32.mrf.mxu1 }
  0xd9   :  { %398 = vst [vmem:[%s546_s2 + $0x8] sm:$0xff] %v366_v18   ;;  %402 = vst [vmem:[%s546_s2 + $0x28] sm:$0xff] %v386_v19   ;;  %v361_v22 = vpack.c.bf16 %v162_v20, %v159_v14  ;;  %v381_v23 = vpack.c.bf16 %v194_v21, %v191_v15 }
  0xda   :  { %v431_v24 = vpop.f32.mrf.mxu0  ;;  %v439_v25 = vpop.f32.mrf.mxu1 }
  0xdb   :  { %362 = vst [vmem:[%s546_s2] sm:$0xff] %v361_v22   ;;  %401 = vst [vmem:[%s546_s2 + $0x20] sm:$0xff] %v381_v23  }
  0xdc   :  { %v175_v26 = vpop.f32.mrf.mxu0  ;;  %v207_v27 = vpop.f32.mrf.mxu1 }
  0xde   :  { %v432_v28 = vpop.f32.mrf.mxu0  ;;  %v440_v29 = vpop.f32.mrf.mxu1 }
  0xdf   :  { %v376_v30 = vpack.c.bf16 %v432_v28, %v431_v24  ;;  %v396_v31 = vpack.c.bf16 %v440_v29, %v439_v25 }
  0xe0   :  { %v178_v32 = vpop.f32.mrf.mxu0  ;;  %v210_v33 = vpop.f32.mrf.mxu1 }
  0xe1   :  { %400 = vst [vmem:[%s546_s2 + $0x18] sm:$0xff] %v376_v30   ;;  %404 = vst [vmem:[%s546_s2 + $0x38] sm:$0xff] %v396_v31   ;;  %v371_v34 = vpack.c.bf16 %v178_v32, %v175_v26  ;;  %v391_v35 = vpack.c.bf16 %v210_v33, %v207_v27 }
  0xe3   :  { %399 = vst [vmem:[%s546_s2 + $0x10] sm:$0xff] %v371_v34   ;;  %403 = vst [vmem:[%s546_s2 + $0x30] sm:$0xff] %v391_v35  }

// kernel: graph_convolution.3
= control target key start
LH: loop header
LB: loop body
LE: loop exit
PB: predicated region body
PF: predicated region fallthrough
CT: control target
= control target key end

     0   :  { %s562_s1 = inlined_call_operand.vmem [shape: bf16[128,128], index: 1, kind: input, shape index: {}]   ;;  %s563_s0 = inlined_call_operand.vmem [shape: f32[128,128], index: 0, kind: input, shape index: {}]   ;;  %s564_s2 = inlined_call_operand.vmem [shape: f32[1,128], index: 2, kind: input, shape index: {}]   ;;  %s565_s3 = inlined_call_operand.vmem [shape: f32[128,128], index: 3, kind: output, shape index: {}]  }
   0x1   :  { %v411_v0 = vld [vmem:[%s562_s1 + $0x38] sm:$0xff]   ;;  %v412_v1 = vld [vmem:[%s562_s1 + $0x30] sm:$0xff]   ;;  %v413_v2 = vld [vmem:[%s562_s1 + $0x28] sm:$0xff]  }
   0x2   :  { %362 = vmatprep.subr.bf16.mxu0 %v411_v0  ;;  %394 = vmatprep.subr.bf16.mxu1 %v411_v0  ;;  %v414_v3 = vld [vmem:[%s562_s1 + $0x20] sm:$0xff]   ;;  %v36_v5 = vld [vmem:[%s563_s0 + $0x8] sm:$0xff]  ;;  %v415_v10 = vld [vmem:[%s562_s1 + $0x18] sm:$0xff]  }
   0x3   :  { %363 = vmatpush3.bf16.msra.mxu0 %v411_v0  ;;  %402 = vmatpush3.bf16.msra.mxu1 %v411_v0  ;;  %v35_v4 = vld [vmem:[%s563_s0] sm:$0xff]  ;;  %v44_v8 = vld [vmem:[%s563_s0 + $0x48] sm:$0xff]  ;;  %v416_v11 = vld [vmem:[%s562_s1 + $0x10] sm:$0xff]  }
   0x4   :  { %364 = vmatprep.subr.bf16.mxu0 %v412_v1  ;;  %395 = vmatprep.subr.bf16.mxu1 %v412_v1  ;;  %v43_v6 = vld [vmem:[%s563_s0 + $0x40] sm:$0xff]  ;;  %v51_v7 = vpack.c.bf16 %v36_v5, %v35_v4  ;;  %v417_v12 = vld [vmem:[%s562_s1 + $0x8] sm:$0xff]   ;;  %v37_v14 = vld [vmem:[%s563_s0 + $0x10] sm:$0xff] }
   0x5   :  { %v55_v9 = vpack.c.bf16 %v44_v8, %v43_v6  ;;  %v418_v13 = vld [vmem:[%s562_s1] sm:$0xff]   ;;  %v38_v15 = vld [vmem:[%s563_s0 + $0x18] sm:$0xff]  ;;  %v45_v16 = vld [vmem:[%s563_s0 + $0x50] sm:$0xff] }
   0x6   :  { %378 = vmatprep.mubr.bf16.mxu0 %v51_v7  ;;  %v46_v17 = vld [vmem:[%s563_s0 + $0x58] sm:$0xff]  ;;  %v39_v18 = vld [vmem:[%s563_s0 + $0x20] sm:$0xff]  ;;  %v40_v19 = vld [vmem:[%s563_s0 + $0x28] sm:$0xff]  ;;  %v52_v22 = vpack.c.bf16 %v38_v15, %v37_v14 }
   0x7   :  { %365 = vmatpush3.bf16.msra.mxu0 %v412_v1  ;;  %403 = vmatpush3.bf16.msra.mxu1 %v412_v1  ;;  %v47_v20 = vld [vmem:[%s563_s0 + $0x60] sm:$0xff]  ;;  %v48_v21 = vld [vmem:[%s563_s0 + $0x68] sm:$0xff]  ;;  %v56_v23 = vpack.c.bf16 %v46_v17, %v45_v16  ;;  %v53_v24 = vpack.c.bf16 %v40_v19, %v39_v18  ;;  %v41_v26 = vld [vmem:[%s563_s0 + $0x30] sm:$0xff] }
   0x8   :  { %366 = vmatprep.subr.bf16.mxu0 %v413_v2  ;;  %396 = vmatprep.subr.bf16.mxu1 %v413_v2  ;;  %v57_v25 = vpack.c.bf16 %v48_v21, %v47_v20  ;;  %v42_v27 = vld [vmem:[%s563_s0 + $0x38] sm:$0xff]  ;;  %v49_v28 = vld [vmem:[%s563_s0 + $0x70] sm:$0xff]  ;;  %v345_v33 = vld [vmem:[%s564_s2] ss:$0 sm:$0xff] }
   0x9   :  { %386 = vmatprep.mubr.bf16.mxu1 %v55_v9  ;;  %v50_v29 = vld [vmem:[%s563_s0 + $0x78] sm:$0xff]  ;;  %v54_v30 = vpack.c.bf16 %v42_v27, %v41_v26 }
   0xa   :  { %v58_v31 = vpack.c.bf16 %v50_v29, %v49_v28 }
   0xb   :  { %367 = vmatpush3.bf16.msra.mxu0 %v413_v2  ;;  %404 = vmatpush3.bf16.msra.mxu1 %v413_v2 }
   0xc   :  { %368 = vmatprep.subr.bf16.mxu0 %v414_v3  ;;  %397 = vmatprep.subr.bf16.mxu1 %v414_v3 }
   0xf   :  { %369 = vmatpush3.bf16.msra.mxu0 %v414_v3  ;;  %405 = vmatpush3.bf16.msra.mxu1 %v414_v3 }
  0x10   :  { %370 = vmatprep.subr.bf16.mxu0 %v415_v10  ;;  %398 = vmatprep.subr.bf16.mxu1 %v415_v10 }
  0x13   :  { %371 = vmatpush3.bf16.msra.mxu0 %v415_v10  ;;  %406 = vmatpush3.bf16.msra.mxu1 %v415_v10 }
  0x14   :  { %372 = vmatprep.subr.bf16.mxu0 %v416_v11  ;;  %399 = vmatprep.subr.bf16.mxu1 %v416_v11 }
  0x17   :  { %373 = vmatpush3.bf16.msra.mxu0 %v416_v11  ;;  %407 = vmatpush3.bf16.msra.mxu1 %v416_v11 }
  0x18   :  { %374 = vmatprep.subr.bf16.mxu0 %v417_v12  ;;  %400 = vmatprep.subr.bf16.mxu1 %v417_v12 }
  0x1b   :  { %375 = vmatpush3.bf16.msra.mxu0 %v417_v12  ;;  %408 = vmatpush3.bf16.msra.mxu1 %v417_v12 }
  0x1c   :  { %376 = vmatprep.subr.bf16.mxu0 %v418_v13  ;;  %401 = vmatprep.subr.bf16.mxu1 %v418_v13 }
  0x1f   :  { %377 = vmatpush3.bf16.msra.mxu0 %v418_v13  ;;  %409 = vmatpush3.bf16.msra.mxu1 %v418_v13 }
  0x22   :  { %379 = vmatmul.mubr.bf16.vlgmr.msra.gmra.mxu0 %v52_v22  ;;  %387 = vmatmul.mubr.bf16.vlgmr.msra.gmra.mxu1 %v56_v23 }
  0x23   :  { %382 = vmatprep.mubr.bf16.mxu0 %v53_v24  ;;  %390 = vmatprep.mubr.bf16.mxu1 %v57_v25 }
  0x2a   :  { %383 = vmatmul.mubr.bf16.gmra.mxu0 %v54_v30  ;;  %391 = vmatmul.mubr.bf16.gmra.mxu1 %v58_v31 }
  0xe2   :  { %v380_v32 = vpop.f32.mrf.mxu0  ;;  %v388_v34 = vpop.f32.mrf.mxu1 }
  0xe3   :  { %v301_v37 = vadd.f32 %v380_v32, %v345_v33  ;;  %v309_v38 = vadd.f32 %v388_v34, %v345_v33 }
  0xe4   :  { %v178_v35 = vpop.f32.mrf.mxu0  ;;  %v210_v36 = vpop.f32.mrf.mxu1 }
  0xe5   :  { %317 = vst [vmem:[%s565_s3 + $0x10] sm:$0xff] %v301_v37  ;;  %325 = vst [vmem:[%s565_s3 + $0x50] sm:$0xff] %v309_v38  ;;  %v299_v41 = vadd.f32 %v345_v33, %v178_v35  ;;  %v307_v42 = vadd.f32 %v345_v33, %v210_v36 }
  0xe6   :  { %v381_v39 = vpop.f32.mrf.mxu0  ;;  %v389_v40 = vpop.f32.mrf.mxu1 }
  0xe7   :  { %315 = vst [vmem:[%s565_s3] sm:$0xff] %v299_v41  ;;  %323 = vst [vmem:[%s565_s3 + $0x40] sm:$0xff] %v307_v42  ;;  %v302_v45 = vadd.f32 %v381_v39, %v345_v33  ;;  %v310_v46 = vadd.f32 %v389_v40, %v345_v33 }
  0xe8   :  { %v181_v43 = vpop.f32.mrf.mxu0  ;;  %v213_v44 = vpop.f32.mrf.mxu1 }
  0xe9   :  { %318 = vst [vmem:[%s565_s3 + $0x18] sm:$0xff] %v302_v45  ;;  %326 = vst [vmem:[%s565_s3 + $0x58] sm:$0xff] %v310_v46  ;;  %v300_v49 = vadd.f32 %v345_v33, %v181_v43  ;;  %v308_v50 = vadd.f32 %v345_v33, %v213_v44 }
  0xea   :  { %v384_v47 = vpop.f32.mrf.mxu0  ;;  %v392_v48 = vpop.f32.mrf.mxu1 }
  0xeb   :  { %316 = vst [vmem:[%s565_s3 + $0x8] sm:$0xff] %v300_v49  ;;  %324 = vst [vmem:[%s565_s3 + $0x48] sm:$0xff] %v308_v50  ;;  %v305_v53 = vadd.f32 %v384_v47, %v345_v33  ;;  %v313_v54 = vadd.f32 %v392_v48, %v345_v33 }
  0xec   :  { %v194_v51 = vpop.f32.mrf.mxu0  ;;  %v226_v52 = vpop.f32.mrf.mxu1 }
  0xed   :  { %321 = vst [vmem:[%s565_s3 + $0x30] sm:$0xff] %v305_v53  ;;  %329 = vst [vmem:[%s565_s3 + $0x70] sm:$0xff] %v313_v54  ;;  %v303_v57 = vadd.f32 %v345_v33, %v194_v51  ;;  %v311_v58 = vadd.f32 %v345_v33, %v226_v52 }
  0xee   :  { %v385_v55 = vpop.f32.mrf.mxu0  ;;  %v393_v56 = vpop.f32.mrf.mxu1 }
  0xef   :  { %319 = vst [vmem:[%s565_s3 + $0x20] sm:$0xff] %v303_v57  ;;  %327 = vst [vmem:[%s565_s3 + $0x60] sm:$0xff] %v311_v58  ;;  %v306_v61 = vadd.f32 %v385_v55, %v345_v33  ;;  %v314_v62 = vadd.f32 %v393_v56, %v345_v33 }
  0xf0   :  { %v197_v59 = vpop.f32.mrf.mxu0  ;;  %v229_v60 = vpop.f32.mrf.mxu1 }
  0xf1   :  { %322 = vst [vmem:[%s565_s3 + $0x38] sm:$0xff] %v306_v61  ;;  %330 = vst [vmem:[%s565_s3 + $0x78] sm:$0xff] %v314_v62  ;;  %v304_v63 = vadd.f32 %v345_v33, %v197_v59  ;;  %v312_v0 = vadd.f32 %v345_v33, %v229_v60 }
  0xf3   :  { %320 = vst [vmem:[%s565_s3 + $0x28] sm:$0xff] %v304_v63  ;;  %328 = vst [vmem:[%s565_s3 + $0x68] sm:$0xff] %v312_v0 }

</bundles_post_ra>
